<compile_context>
chip_gen: v7x
topology: tpu7x:2x2x1
jax: 0.10.0
libtpu: 0.0.40
codegen_flags: <defaults>
</compile_context>

<pallas_src>
import functools

import numpy as np
import jax
import jax.numpy as jnp
from jax import lax
from jax.experimental import pallas as pl
from jax.experimental.pallas import tpu as pltpu

LANE = 128               # lane width: feature/output dims padded to this
ROW_TILE = 512           # tm for large graphs (output row tile)
K_TILE = 1024            # tk for large graphs (contraction over neighbors)
COMPUTE_DTYPE = jnp.bfloat16


def _vmem_limit_bytes():
    """Generation-aware VMEM budget (v7x: 64 MiB/TC, v5e/v6e: 128 MiB)."""
    try:
        cap = int(pltpu.get_tpu_info().vmem_capacity_bytes)
    except Exception:
        cap = 64 * 1024 * 1024          # conservative fallback (v7x per-TC)
    # leave headroom for the compiler's own scratch
    return max(32 * 1024 * 1024, min(cap * 3 // 4, 96 * 1024 * 1024))


VMEM_LIMIT = _vmem_limit_bytes()


# ----------------------------------------------------------------------------
# Padding / tiling helpers
# ----------------------------------------------------------------------------
def _round_up(x, m):
    return ((x + m - 1) // m) * m


def _node_tiling(n):
    """Return (n_pad, tm, tk) with n_pad % tm == 0 and n_pad % tk == 0."""
    n_pad = _round_up(n, LANE)
    if n_pad <= ROW_TILE:
        return n_pad, n_pad, n_pad            # single tile in both dims
    if n_pad <= K_TILE:
        n_pad = _round_up(n_pad, ROW_TILE)
        return n_pad, ROW_TILE, n_pad         # row-tiled, single K step
    n_pad = _round_up(n_pad, K_TILE)
    return n_pad, ROW_TILE, K_TILE


def _pad2(a, rows, cols, dtype):
    return jnp.pad(a, ((0, rows - a.shape[0]), (0, cols - a.shape[1]))).astype(dtype)


# ----------------------------------------------------------------------------
# Pallas kernel 1: feature transform  H = (X [+ seed]) @ W   (row-tiled)
# ----------------------------------------------------------------------------
def _transform_kernel(x_ref, w_ref, h_ref):
    h_ref[...] = jnp.dot(x_ref[...], w_ref[...],
                         preferred_element_type=jnp.float32).astype(h_ref.dtype)


def _transform_seed_kernel(x_ref, seed_ref, w_ref, h_ref):
    # Cross-graph seed add fused here: free VPU filler under the MXU matmul.
    xs = x_ref[...] + seed_ref[...]
    h_ref[...] = jnp.dot(xs, w_ref[...],
                         preferred_element_type=jnp.float32).astype(h_ref.dtype)


def feature_transform(x_p, w_p, seed_p=None, *, tm):
    n_pad, f_pad = x_p.shape
    o_pad = w_p.shape[1]
    grid = (n_pad // tm,)

    row_spec = pl.BlockSpec((tm, f_pad), lambda i: (i, 0))
    w_spec = pl.BlockSpec((f_pad, o_pad), lambda i: (0, 0))
    out_spec = pl.BlockSpec((tm, o_pad), lambda i: (i, 0))

    if seed_p is None:
        kernel = _transform_kernel
        in_specs = [row_spec, w_spec]
        args = (x_p, w_p)
    else:
        kernel = _transform_seed_kernel
        in_specs = [row_spec, row_spec, w_spec]
        args = (x_p, seed_p, w_p)

    cost = pl.CostEstimate(
        flops=2 * n_pad * f_pad * o_pad,
        transcendentals=0,
        bytes_accessed=int(x_p.size * x_p.dtype.itemsize
                           + w_p.size * w_p.dtype.itemsize
                           + n_pad * o_pad * 2),
    )
    return pl.pallas_call(
        kernel,
        out_shape=jax.ShapeDtypeStruct((n_pad, o_pad), COMPUTE_DTYPE),
        grid=grid,
        in_specs=in_specs,
        out_specs=out_spec,
        compiler_params=pltpu.CompilerParams(
            dimension_semantics=("parallel",),
            vmem_limit_bytes=VMEM_LIMIT,
        ),
        cost_estimate=cost,
    )(*args)


# ----------------------------------------------------------------------------
# Pallas kernel 2: K-tiled aggregation  out = A @ H + b (+ ReLU)
#   grid = (rows/tm, N/tk); f32 accumulator in VMEM scratch;
#   init at k==0, bias/ReLU/cast at k==last.
# ----------------------------------------------------------------------------
def _aggregate_kernel(adj_ref, h_ref, b_ref, o_ref, acc_ref, *, relu):
    @pl.when(pl.program_id(1) == 0)
    def _():
        acc_ref[...] = jnp.zeros_like(acc_ref)

    acc_ref[...] += jnp.dot(adj_ref[...], h_ref[...],
                            preferred_element_type=jnp.float32)

    @pl.when(pl.program_id(1) == pl.num_programs(1) - 1)
    def _():
        acc = acc_ref[...] + b_ref[...]
        if relu:
            acc = jnp.maximum(acc, 0.0)
        o_ref[...] = acc.astype(o_ref.dtype)


def neighborhood_aggregate(adj_p, h_p, b_p, *, relu, out_dtype, tm, tk):
    n_pad = adj_p.shape[0]
    o_pad = h_p.shape[1]
    grid = (n_pad // tm, n_pad // tk)

    cost = pl.CostEstimate(
        flops=2 * n_pad * n_pad * o_pad,
        transcendentals=0,
        bytes_accessed=int(adj_p.size * adj_p.dtype.itemsize
                           + h_p.size * h_p.dtype.itemsize
                           + b_p.size * b_p.dtype.itemsize
                           + n_pad * o_pad * np.dtype(out_dtype).itemsize),
    )
    return pl.pallas_call(
        functools.partial(_aggregate_kernel, relu=relu),
        out_shape=jax.ShapeDtypeStruct((n_pad, o_pad), out_dtype),
        grid=grid,
        in_specs=[
            pl.BlockSpec((tm, tk), lambda i, k: (i, k)),      # A_hat tile (streamed)
            pl.BlockSpec((tk, o_pad), lambda i, k: (k, 0)),   # H K-slab
            pl.BlockSpec((1, o_pad), lambda i, k: (0, 0)),    # bias
        ],
        out_specs=pl.BlockSpec((tm, o_pad), lambda i, k: (i, 0)),
        scratch_shapes=[pltpu.VMEM((tm, o_pad), jnp.float32)],
        compiler_params=pltpu.CompilerParams(
            dimension_semantics=("parallel", "arbitrary"),
            vmem_limit_bytes=VMEM_LIMIT,
        ),
        cost_estimate=cost,
    )(adj_p, h_p, b_p)


def gcn_conv(adj_p, x_p, w_p, b_p, *, relu, tm, tk, seed_p=None,
             out_dtype=COMPUTE_DTYPE):
    """One GCNConv layer: hoisted transform + K-tiled row aggregation."""
    h = feature_transform(x_p, w_p, seed_p, tm=tm)
    return neighborhood_aggregate(adj_p, h, b_p, relu=relu, out_dtype=out_dtype,
                                  tm=tm, tk=tk)


# ----------------------------------------------------------------------------
# Plain-JAX glue: normalized adjacency built directly at padded size
# ----------------------------------------------------------------------------
def normalized_adjacency_padded(edge_index, edge_weight, num_nodes, n_pad,
                                dtype=COMPUTE_DTYPE):
    """Dense D^-1/2 (A + I) D^-1/2, scattered in f32 at padded size, cast once."""
    src = edge_index[0]
    dst = edge_index[1]
    loop = jnp.arange(num_nodes, dtype=edge_index.dtype)
    src_a = jnp.concatenate([src, loop])
    dst_a = jnp.concatenate([dst, loop])
    ew = jnp.concatenate([edge_weight.astype(jnp.float32),
                          jnp.ones((num_nodes,), jnp.float32)])
    deg = jnp.zeros((num_nodes,), jnp.float32).at[dst_a].add(ew)
    dinv = jnp.where(deg > 0, lax.rsqrt(deg), 0.0)
    norm = dinv[src_a] * ew * dinv[dst_a]
    a = jnp.zeros((n_pad, n_pad), jnp.float32).at[dst_a, src_a].add(norm)
    return a.astype(dtype)


def glorot(key, shape):
    fan_in, fan_out = shape
    lim = (6.0 / (fan_in + fan_out)) ** 0.5
    return jax.random.uniform(key, shape, jnp.float32, -lim, lim)


def init_params(key, s_input, t_input, output):
    k1, k2, k3 = jax.random.split(key, 3)
    return {
        "w1": glorot(k1, (s_input, 2 * output)),
        "b1": jnp.zeros((2 * output,), jnp.float32),
        "w2": glorot(k2, (t_input, 2 * output)),
        "b2": jnp.zeros((2 * output,), jnp.float32),
        "w3": glorot(k3, (2 * output, output)),
        "b3": jnp.zeros((output,), jnp.float32),
    }


def cross_model_forward(params, a1p, x1, a2p, x2, seeds):
    """Forward pass. a1p/a2p are prebuilt padded bf16 normalized adjacencies
    (their construction is hoisted out of this jitted function)."""
    n1, f1 = x1.shape
    n2, f2 = x2.shape
    hid = params["w1"].shape[1]       # 2 * output
    d_out = params["w3"].shape[1]     # output

    n1_pad, tm1, tk1 = _node_tiling(n1)
    n2_pad, tm2, tk2 = _node_tiling(n2)
    assert a1p.shape[0] == n1_pad and a2p.shape[0] == n2_pad

    f1_pad = _round_up(f1, LANE)
    f2_pad = _round_up(f2, LANE)
    hid_pad = _round_up(hid, LANE)
    out_pad = _round_up(d_out, LANE)

    x1p = _pad2(x1, n1_pad, f1_pad, COMPUTE_DTYPE)
    x2p = _pad2(x2, n2_pad, f2_pad, COMPUTE_DTYPE)

    w1p = _pad2(params["w1"], f1_pad, hid_pad, COMPUTE_DTYPE)
    w2p = _pad2(params["w2"], f2_pad, hid_pad, COMPUTE_DTYPE)
    w3p = _pad2(params["w3"], hid_pad, out_pad, COMPUTE_DTYPE)
    b1p = _pad2(params["b1"].reshape(1, -1), 1, hid_pad, jnp.float32)
    b2p = _pad2(params["b2"].reshape(1, -1), 1, hid_pad, jnp.float32)
    b3p = _pad2(params["b3"].reshape(1, -1), 1, out_pad, jnp.float32)

    # conv1 / conv2 with fused ReLU (independent -> XLA may overlap them)
    h1 = gcn_conv(a1p, x1p, w1p, b1p, relu=True, tm=tm1, tk=tk1)
    h2 = gcn_conv(a2p, x2p, w2p, b2p, relu=True, tm=tm2, tk=tk2)

    # cross-graph seed propagation (scatter glue in plain JAX, bf16)
    x1_seed = jnp.zeros_like(h2).at[seeds[1]].set(h1[seeds[0]])
    x2_seed = jnp.zeros_like(h1).at[seeds[0]].set(h2[seeds[1]])

    # conv3 with the cross-graph seed add fused into the transform kernel
    out1 = gcn_conv(a1p, h1, w3p, b3p, seed_p=x2_seed, relu=False,
                    out_dtype=jnp.float32, tm=tm1, tk=tk1)
    out2 = gcn_conv(a2p, h2, w3p, b3p, seed_p=x1_seed, relu=False,
                    out_dtype=jnp.float32, tm=tm2, tk=tk2)
    return out1[:n1, :d_out], out2[:n2, :d_out]


# ----------------------------------------------------------------------------
# Pure-JAX f32 reference (loose numerical check of the bf16 kernels)
# ----------------------------------------------------------------------------
def reference_forward(params, x1, ei1, ew1, x2, ei2, ew2, seeds):
    n1, n2 = x1.shape[0], x2.shape[0]
    a1 = normalized_adjacency_padded(ei1, ew1, n1, n1, jnp.float32)
    a2 = normalized_adjacency_padded(ei2, ew2, n2, n2, jnp.float32)
    h1 = jnp.maximum(a1 @ (x1 @ params["w1"]) + params["b1"], 0.0)
    h2 = jnp.maximum(a2 @ (x2 @ params["w2"]) + params["b2"], 0.0)
    x1_seed = jnp.zeros_like(h2).at[seeds[1]].set(h1[seeds[0]])
    x2_seed = jnp.zeros_like(h1).at[seeds[0]].set(h2[seeds[1]])
    o1 = a1 @ ((h1 + x2_seed) @ params["w3"]) + params["b3"]
    o2 = a2 @ ((h2 + x1_seed) @ params["w3"]) + params["b3"]
    return o1, o2


# ----------------------------------------------------------------------------
# Demo / smoke test
# ----------------------------------------------------------------------------
def ring_graph(key, num_nodes):
    """Undirected ring: 2*num_nodes directed edges with deterministic weights."""
    i = jnp.arange(num_nodes, dtype=jnp.int32)
    j = (i + 1) % num_nodes
    src = jnp.concatenate([i, j])
    dst = jnp.concatenate([j, i])
    edge_index = jnp.stack([src, dst], axis=0)
    w_half = jax.random.uniform(key, (num_nodes,), jnp.float32, 0.5, 1.5)
    edge_weight = jnp.concatenate([w_half, w_half])  # symmetric weights
    return edge_index, edge_weight


if __name__ == "__main__":
    key = jax.random.PRNGKey(0)
    k_par, k_x1, k_x2, k_e1, k_e2 = jax.random.split(key, 5)

    # small shapes consistent with the module
    s_input, t_input, output = 8, 10, 16
    n1, n2 = 16, 12

    params = init_params(k_par, s_input, t_input, output)

    x1 = jax.random.normal(k_x1, (n1, s_input), jnp.float32)
    x2 = jax.random.normal(k_x2, (n2, t_input), jnp.float32)
    edge_index1, edge_weight1 = ring_graph(k_e1, n1)
    edge_index2, edge_weight2 = ring_graph(k_e2, n2)

    # seeds[0]: anchor node ids in graph 1, seeds[1]: matching ids in graph 2
    seeds = jnp.array([[0, 3, 5, 7],
                       [1, 2, 4, 6]], dtype=jnp.int32)

    # Hoisted (graph-static) normalized-adjacency construction, padded + bf16.
    n1_pad, _, _ = _node_tiling(n1)
    n2_pad, _, _ = _node_tiling(n2)
    a1p = normalized_adjacency_padded(edge_index1, edge_weight1, n1, n1_pad)
    a2p = normalized_adjacency_padded(edge_index2, edge_weight2, n2, n2_pad)
    jax.block_until_ready((a1p, a2p))

    fwd = jax.jit(cross_model_forward)
    out1, out2 = fwd(params, a1p, x1, a2p, x2, seeds)
    jax.block_until_ready((out1, out2))

    assert out1.shape == (n1, output) and out2.shape == (n2, output)
    assert jnp.all(jnp.isfinite(out1)) and jnp.all(jnp.isfinite(out2))

    # loose tolerance: kernel path uses bf16 inputs with f32 accumulation
    ref1, ref2 = reference_forward(params, x1, edge_index1, edge_weight1,
                                   x2, edge_index2, edge_weight2, seeds)
    assert jnp.allclose(out1, ref1, atol=0.2, rtol=0.2)
    assert jnp.allclose(out2, ref2, atol=0.2, rtol=0.2)

    print("KERNEL_OK")
</pallas_src>

<mosaic_0001>
module attributes {stable_mosaic.version = 11 : i64} {
  func.func @_transform_kernel(%arg0: i32, %arg1: memref<128x128xbf16, #tpu.memory_space<vmem>>, %arg2: memref<128x128xbf16, #tpu.memory_space<vmem>>, %arg3: memref<128x128xbf16, #tpu.memory_space<vmem>>) attributes {dimension_semantics = [#tpu.dimension_semantics<parallel>], iteration_bounds = array<i64: 1>, scalar_prefetch = 0 : i64, scratch_operands = 0 : i64, tpu.core_type = #tpu.core_type<tc>, window_params = [{transform_indices = @transform_0, window_bounds = array<i64: 128, 128>}, {pipeline_mode = #tpu.pipeline_mode<synchronous>, transform_indices = @transform_1, window_bounds = array<i64: 128, 128>}, {transform_indices = @transform_2, window_bounds = array<i64: 128, 128>}]} {
    %c0 = arith.constant 0 : index
    %c0_0 = arith.constant 0 : index
    %0 = vector.load %arg1[%c0, %c0_0] : memref<128x128xbf16, #tpu.memory_space<vmem>>, vector<128x128xbf16>
    %c0_1 = arith.constant 0 : index
    %c0_2 = arith.constant 0 : index
    %1 = vector.load %arg2[%c0_1, %c0_2] : memref<128x128xbf16, #tpu.memory_space<vmem>>, vector<128x128xbf16>
    %cst = arith.constant dense<0.000000e+00> : vector<128x128xf32>
    %2 = tpu.matmul %0, %1, %cst {dimension_numbers = #tpu.dot_dimension_numbers<[1], [0], [0], [1], [0, 0, 1, 1], [], []>} : vector<128x128xbf16>, vector<128x128xbf16>, vector<128x128xf32> -> vector<128x128xf32>
    %3 = arith.truncf %2 : vector<128x128xf32> to vector<128x128xbf16>
    %c0_3 = arith.constant 0 : index
    %c0_4 = arith.constant 0 : index
    %4 = vector.load %arg3[%c0_3, %c0_4] : memref<128x128xbf16, #tpu.memory_space<vmem>>, vector<128x128xbf16>
    tpu.vector_store %arg3[%c0_3, %c0_4], %3 {strides = array<i32>} : memref<128x128xbf16, #tpu.memory_space<vmem>>, vector<128x128xbf16>,
    return
  }
  func.func @transform_0(%arg0: i32) -> (i32, i32) {
    %c0_i32 = arith.constant 0 : i32
    %c0_i32_0 = arith.constant 0 : i32
    return %arg0, %c0_i32 : i32, i32
  }
  func.func @transform_1(%arg0: i32) -> (i32, i32) {
    %c0_i32 = arith.constant 0 : i32
    %c0_i32_0 = arith.constant 0 : i32
    %c0_i32_1 = arith.constant 0 : i32
    return %c0_i32, %c0_i32_0 : i32, i32
  }
  func.func @transform_2(%arg0: i32) -> (i32, i32) {
    %c0_i32 = arith.constant 0 : i32
    %c0_i32_0 = arith.constant 0 : i32
    return %arg0, %c0_i32 : i32, i32
  }
}

module attributes {stable_mosaic.version = 11 : i64} {
  func.func @_aggregate_kernel(%arg0: i32, %arg1: i32, %arg2: memref<128x128xbf16, #tpu.memory_space<vmem>>, %arg3: memref<128x128xbf16, #tpu.memory_space<vmem>>, %arg4: memref<1x128xf32, #tpu.memory_space<vmem>>, %arg5: memref<128x128xbf16, #tpu.memory_space<vmem>>, %arg6: memref<128x128xf32, #tpu.memory_space<vmem>>) attributes {dimension_semantics = [#tpu.dimension_semantics<parallel>, #tpu.dimension_semantics<arbitrary>], iteration_bounds = array<i64: 1, 1>, scalar_prefetch = 0 : i64, scratch_operands = 1 : i64, tpu.core_type = #tpu.core_type<tc>, window_params = [{transform_indices = @transform_0, window_bounds = array<i64: 128, 128>}, {transform_indices = @transform_1, window_bounds = array<i64: 128, 128>}, {pipeline_mode = #tpu.pipeline_mode<synchronous>, transform_indices = @transform_2, window_bounds = array<i64: 1, 128>}, {transform_indices = @transform_3, window_bounds = array<i64: 128, 128>}]} {
    %c0_i32 = arith.constant 0 : i32
    %0 = arith.cmpi eq, %arg1, %c0_i32 : i32
    %1 = arith.extui %0 : i1 to i32
    %c0_i32_0 = arith.constant 0 : i32
    %2 = arith.cmpi ne, %1, %c0_i32_0 : i32
    scf.if %2 {
      %cst_10 = arith.constant 0.000000e+00 : f32
      %12 = vector.broadcast %cst_10 : f32 to vector<128x128xf32>
      %c0_11 = arith.constant 0 : index
      %c0_12 = arith.constant 0 : index
      %13 = vector.load %arg6[%c0_11, %c0_12] : memref<128x128xf32, #tpu.memory_space<vmem>>, vector<128x128xf32>
      tpu.vector_store %arg6[%c0_11, %c0_12], %12 {strides = array<i32>} : memref<128x128xf32, #tpu.memory_space<vmem>>, vector<128x128xf32>,
    } else {
    }
    %c0 = arith.constant 0 : index
    %c0_1 = arith.constant 0 : index
    %3 = vector.load %arg6[%c0, %c0_1] : memref<128x128xf32, #tpu.memory_space<vmem>>, vector<128x128xf32>
    %c0_2 = arith.constant 0 : index
    %c0_3 = arith.constant 0 : index
    %4 = vector.load %arg2[%c0_2, %c0_3] : memref<128x128xbf16, #tpu.memory_space<vmem>>, vector<128x128xbf16>
    %c0_4 = arith.constant 0 : index
    %c0_5 = arith.constant 0 : index
    %5 = vector.load %arg3[%c0_4, %c0_5] : memref<128x128xbf16, #tpu.memory_space<vmem>>, vector<128x128xbf16>
    %cst = arith.constant dense<0.000000e+00> : vector<128x128xf32>
    %6 = tpu.matmul %4, %5, %cst {dimension_numbers = #tpu.dot_dimension_numbers<[1], [0], [0], [1], [0, 0, 1, 1], [], []>} : vector<128x128xbf16>, vector<128x128xbf16>, vector<128x128xf32> -> vector<128x128xf32>
    %7 = arith.addf %3, %6 : vector<128x128xf32>
    %c0_6 = arith.constant 0 : index
    %c0_7 = arith.constant 0 : index
    %8 = vector.load %arg6[%c0_6, %c0_7] : memref<128x128xf32, #tpu.memory_space<vmem>>, vector<128x128xf32>
    tpu.vector_store %arg6[%c0_6, %c0_7], %7 {strides = array<i32>} : memref<128x128xf32, #tpu.memory_space<vmem>>, vector<128x128xf32>,
    %c0_i32_8 = arith.constant 0 : i32
    %9 = arith.cmpi eq, %arg1, %c0_i32_8 : i32
    %10 = arith.extui %9 : i1 to i32
    %c0_i32_9 = arith.constant 0 : i32
    %11 = arith.cmpi ne, %10, %c0_i32_9 : i32
    scf.if %11 {
      %c0_10 = arith.constant 0 : index
      %c0_11 = arith.constant 0 : index
      %12 = vector.load %arg6[%c0_10, %c0_11] : memref<128x128xf32, #tpu.memory_space<vmem>>, vector<128x128xf32>
      %c0_12 = arith.constant 0 : index
      %c0_13 = arith.constant 0 : index
      %13 = vector.load %arg4[%c0_12, %c0_13] : memref<1x128xf32, #tpu.memory_space<vmem>>, vector<1x128xf32>
      %14 = vector.broadcast %13 : vector<1x128xf32> to vector<128x128xf32>
      %15 = arith.addf %12, %14 : vector<128x128xf32>
      %cst_14 = arith.constant 0.000000e+00 : f32
      %16 = vector.broadcast %cst_14 : f32 to vector<128x128xf32>
      %17 = arith.maximumf %15, %16 : vector<128x128xf32>
      %18 = arith.truncf %17 : vector<128x128xf32> to vector<128x128xbf16>
      %c0_15 = arith.constant 0 : index
      %c0_16 = arith.constant 0 : index
      %19 = vector.load %arg5[%c0_15, %c0_16] : memref<128x128xbf16, #tpu.memory_space<vmem>>, vector<128x128xbf16>
      tpu.vector_store %arg5[%c0_15, %c0_16], %18 {strides = array<i32>} : memref<128x128xbf16, #tpu.memory_space<vmem>>, vector<128x128xbf16>,
    } else {
    }
    return
  }
  func.func @transform_0(%arg0: i32, %arg1: i32) -> (i32, i32) {
    %c0_i32 = arith.constant 0 : i32
    return %arg0, %arg1 : i32, i32
  }
  func.func @transform_1(%arg0: i32, %arg1: i32) -> (i32, i32) {
    %c0_i32 = arith.constant 0 : i32
    %c0_i32_0 = arith.constant 0 : i32
    return %arg1, %c0_i32 : i32, i32
  }
  func.func @transform_2(%arg0: i32, %arg1: i32) -> (i32, i32) {
    %c0_i32 = arith.constant 0 : i32
    %c0_i32_0 = arith.constant 0 : i32
    %c0_i32_1 = arith.constant 0 : i32
    return %c0_i32, %c0_i32_0 : i32, i32
  }
  func.func @transform_3(%arg0: i32, %arg1: i32) -> (i32, i32) {
    %c0_i32 = arith.constant 0 : i32
    %c0_i32_0 = arith.constant 0 : i32
    return %arg0, %c0_i32 : i32, i32
  }
}

module attributes {stable_mosaic.version = 11 : i64} {
  func.func @_aggregate_kernel(%arg0: i32, %arg1: i32, %arg2: memref<128x128xbf16, #tpu.memory_space<vmem>>, %arg3: memref<128x128xbf16, #tpu.memory_space<vmem>>, %arg4: memref<1x128xf32, #tpu.memory_space<vmem>>, %arg5: memref<128x128xf32, #tpu.memory_space<vmem>>, %arg6: memref<128x128xf32, #tpu.memory_space<vmem>>) attributes {dimension_semantics = [#tpu.dimension_semantics<parallel>, #tpu.dimension_semantics<arbitrary>], iteration_bounds = array<i64: 1, 1>, scalar_prefetch = 0 : i64, scratch_operands = 1 : i64, tpu.core_type = #tpu.core_type<tc>, window_params = [{transform_indices = @transform_0, window_bounds = array<i64: 128, 128>}, {transform_indices = @transform_1, window_bounds = array<i64: 128, 128>}, {pipeline_mode = #tpu.pipeline_mode<synchronous>, transform_indices = @transform_2, window_bounds = array<i64: 1, 128>}, {transform_indices = @transform_3, window_bounds = array<i64: 128, 128>}]} {
    %c0_i32 = arith.constant 0 : i32
    %0 = arith.cmpi eq, %arg1, %c0_i32 : i32
    %1 = arith.extui %0 : i1 to i32
    %c0_i32_0 = arith.constant 0 : i32
    %2 = arith.cmpi ne, %1, %c0_i32_0 : i32
    scf.if %2 {
      %cst_10 = arith.constant 0.000000e+00 : f32
      %12 = vector.broadcast %cst_10 : f32 to vector<128x128xf32>
      %c0_11 = arith.constant 0 : index
      %c0_12 = arith.constant 0 : index
      %13 = vector.load %arg6[%c0_11, %c0_12] : memref<128x128xf32, #tpu.memory_space<vmem>>, vector<128x128xf32>
      tpu.vector_store %arg6[%c0_11, %c0_12], %12 {strides = array<i32>} : memref<128x128xf32, #tpu.memory_space<vmem>>, vector<128x128xf32>,
    } else {
    }
    %c0 = arith.constant 0 : index
    %c0_1 = arith.constant 0 : index
    %3 = vector.load %arg6[%c0, %c0_1] : memref<128x128xf32, #tpu.memory_space<vmem>>, vector<128x128xf32>
    %c0_2 = arith.constant 0 : index
    %c0_3 = arith.constant 0 : index
    %4 = vector.load %arg2[%c0_2, %c0_3] : memref<128x128xbf16, #tpu.memory_space<vmem>>, vector<128x128xbf16>
    %c0_4 = arith.constant 0 : index
    %c0_5 = arith.constant 0 : index
    %5 = vector.load %arg3[%c0_4, %c0_5] : memref<128x128xbf16, #tpu.memory_space<vmem>>, vector<128x128xbf16>
    %cst = arith.constant dense<0.000000e+00> : vector<128x128xf32>
    %6 = tpu.matmul %4, %5, %cst {dimension_numbers = #tpu.dot_dimension_numbers<[1], [0], [0], [1], [0, 0, 1, 1], [], []>} : vector<128x128xbf16>, vector<128x128xbf16>, vector<128x128xf32> -> vector<128x128xf32>
    %7 = arith.addf %3, %6 : vector<128x128xf32>
    %c0_6 = arith.constant 0 : index
    %c0_7 = arith.constant 0 : index
    %8 = vector.load %arg6[%c0_6, %c0_7] : memref<128x128xf32, #tpu.memory_space<vmem>>, vector<128x128xf32>
    tpu.vector_store %arg6[%c0_6, %c0_7], %7 {strides = array<i32>} : memref<128x128xf32, #tpu.memory_space<vmem>>, vector<128x128xf32>,
    %c0_i32_8 = arith.constant 0 : i32
    %9 = arith.cmpi eq, %arg1, %c0_i32_8 : i32
    %10 = arith.extui %9 : i1 to i32
    %c0_i32_9 = arith.constant 0 : i32
    %11 = arith.cmpi ne, %10, %c0_i32_9 : i32
    scf.if %11 {
      %c0_10 = arith.constant 0 : index
      %c0_11 = arith.constant 0 : index
      %12 = vector.load %arg6[%c0_10, %c0_11] : memref<128x128xf32, #tpu.memory_space<vmem>>, vector<128x128xf32>
      %c0_12 = arith.constant 0 : index
      %c0_13 = arith.constant 0 : index
      %13 = vector.load %arg4[%c0_12, %c0_13] : memref<1x128xf32, #tpu.memory_space<vmem>>, vector<1x128xf32>
      %14 = vector.broadcast %13 : vector<1x128xf32> to vector<128x128xf32>
      %15 = arith.addf %12, %14 : vector<128x128xf32>
      %c0_14 = arith.constant 0 : index
      %c0_15 = arith.constant 0 : index
      %16 = vector.load %arg5[%c0_14, %c0_15] : memref<128x128xf32, #tpu.memory_space<vmem>>, vector<128x128xf32>
      tpu.vector_store %arg5[%c0_14, %c0_15], %15 {strides = array<i32>} : memref<128x128xf32, #tpu.memory_space<vmem>>, vector<128x128xf32>,
    } else {
    }
    return
  }
  func.func @transform_0(%arg0: i32, %arg1: i32) -> (i32, i32) {
    %c0_i32 = arith.constant 0 : i32
    return %arg0, %arg1 : i32, i32
  }
  func.func @transform_1(%arg0: i32, %arg1: i32) -> (i32, i32) {
    %c0_i32 = arith.constant 0 : i32
    %c0_i32_0 = arith.constant 0 : i32
    return %arg1, %c0_i32 : i32, i32
  }
  func.func @transform_2(%arg0: i32, %arg1: i32) -> (i32, i32) {
    %c0_i32 = arith.constant 0 : i32
    %c0_i32_0 = arith.constant 0 : i32
    %c0_i32_1 = arith.constant 0 : i32
    return %c0_i32, %c0_i32_0 : i32, i32
  }
  func.func @transform_3(%arg0: i32, %arg1: i32) -> (i32, i32) {
    %c0_i32 = arith.constant 0 : i32
    %c0_i32_0 = arith.constant 0 : i32
    return %arg0, %c0_i32 : i32, i32
  }
}

module attributes {stable_mosaic.version = 11 : i64} {
  func.func @_transform_seed_kernel(%arg0: i32, %arg1: memref<128x128xbf16, #tpu.memory_space<vmem>>, %arg2: memref<128x128xbf16, #tpu.memory_space<vmem>>, %arg3: memref<128x128xbf16, #tpu.memory_space<vmem>>, %arg4: memref<128x128xbf16, #tpu.memory_space<vmem>>) attributes {dimension_semantics = [#tpu.dimension_semantics<parallel>], iteration_bounds = array<i64: 1>, scalar_prefetch = 0 : i64, scratch_operands = 0 : i64, tpu.core_type = #tpu.core_type<tc>, window_params = [{transform_indices = @transform_0, window_bounds = array<i64: 128, 128>}, {transform_indices = @transform_1, window_bounds = array<i64: 128, 128>}, {pipeline_mode = #tpu.pipeline_mode<synchronous>, transform_indices = @transform_2, window_bounds = array<i64: 128, 128>}, {transform_indices = @transform_3, window_bounds = array<i64: 128, 128>}]} {
    %c0 = arith.constant 0 : index
    %c0_0 = arith.constant 0 : index
    %0 = vector.load %arg1[%c0, %c0_0] : memref<128x128xbf16, #tpu.memory_space<vmem>>, vector<128x128xbf16>
    %c0_1 = arith.constant 0 : index
    %c0_2 = arith.constant 0 : index
    %1 = vector.load %arg2[%c0_1, %c0_2] : memref<128x128xbf16, #tpu.memory_space<vmem>>, vector<128x128xbf16>
    %2 = arith.addf %0, %1 : vector<128x128xbf16>
    %c0_3 = arith.constant 0 : index
    %c0_4 = arith.constant 0 : index
    %3 = vector.load %arg3[%c0_3, %c0_4] : memref<128x128xbf16, #tpu.memory_space<vmem>>, vector<128x128xbf16>
    %cst = arith.constant dense<0.000000e+00> : vector<128x128xf32>
    %4 = tpu.matmul %2, %3, %cst {dimension_numbers = #tpu.dot_dimension_numbers<[1], [0], [0], [1], [0, 0, 1, 1], [], []>} : vector<128x128xbf16>, vector<128x128xbf16>, vector<128x128xf32> -> vector<128x128xf32>
    %5 = arith.truncf %4 : vector<128x128xf32> to vector<128x128xbf16>
    %c0_5 = arith.constant 0 : index
    %c0_6 = arith.constant 0 : index
    %6 = vector.load %arg4[%c0_5, %c0_6] : memref<128x128xbf16, #tpu.memory_space<vmem>>, vector<128x128xbf16>
    tpu.vector_store %arg4[%c0_5, %c0_6], %5 {strides = array<i32>} : memref<128x128xbf16, #tpu.memory_space<vmem>>, vector<128x128xbf16>,
    return
  }
  func.func @transform_0(%arg0: i32) -> (i32, i32) {
    %c0_i32 = arith.constant 0 : i32
    %c0_i32_0 = arith.constant 0 : i32
    return %arg0, %c0_i32 : i32, i32
  }
  func.func @transform_1(%arg0: i32) -> (i32, i32) {
    %c0_i32 = arith.constant 0 : i32
    %c0_i32_0 = arith.constant 0 : i32
    return %arg0, %c0_i32 : i32, i32
  }
  func.func @transform_2(%arg0: i32) -> (i32, i32) {
    %c0_i32 = arith.constant 0 : i32
    %c0_i32_0 = arith.constant 0 : i32
    %c0_i32_1 = arith.constant 0 : i32
    return %c0_i32, %c0_i32_0 : i32, i32
  }
  func.func @transform_3(%arg0: i32) -> (i32, i32) {
    %c0_i32 = arith.constant 0 : i32
    %c0_i32_0 = arith.constant 0 : i32
    return %arg0, %c0_i32 : i32, i32
  }
}

</mosaic_0001>

<bundles_post_ra>
// kernel: cross_model_forward.14
= control target key start
LH: loop header
LB: loop body
LE: loop exit
PB: predicated region body
PF: predicated region fallthrough
CT: control target
= control target key end

     0   :  { %s687_s2 = inlined_call_operand.vmem [shape: bf16[128,128], index: 2, kind: input, shape index: {}]   ;;  %s688_s0 = inlined_call_operand.vmem [shape: bf16[128,128], index: 0, kind: input, shape index: {}]   ;;  %s689_s1 = inlined_call_operand.vmem [shape: bf16[128,128], index: 1, kind: input, shape index: {}]   ;;  %s690_s3 = inlined_call_operand.vmem [shape: bf16[128,128], index: 3, kind: output, shape index: {}]  }
   0x1   :  { %v515_v0 = vld [vmem:[%s687_s2] sm:$0xff]   ;;  %v516_v1 = vld [vmem:[%s687_s2 + $0x8] sm:$0xff]   ;;  %v517_v2 = vld [vmem:[%s687_s2 + $0x10] sm:$0xff]  }
   0x2   :  { %467 = vmatprep.subr.bf16.mxu0 %v515_v0  ;;  %499 = vmatprep.subr.bf16.mxu1 %v515_v0  ;;  %v518_v3 = vld [vmem:[%s687_s2 + $0x18] sm:$0xff]   ;;  %v15_v4 = vld [vmem:[%s688_s0] sm:$0xf]  ;;  %v16_v5 = vld [vmem:[%s688_s0 + $0x4] sm:$0xf] }
   0x3   :  { %468 = vmatpush3.bf16.msra.mxu0 %v515_v0  ;;  %507 = vmatpush3.bf16.msra.mxu1 %v515_v0  ;;  %v31_v6 = vld [vmem:[%s689_s1] sm:$0xf]  ;;  %v32_v7 = vld [vmem:[%s689_s1 + $0x4] sm:$0xf]  ;;  %v520_v19 = vld [vmem:[%s687_s2 + $0x28] sm:$0xff]  }
   0x4   :  { %469 = vmatprep.subr.bf16.mxu0 %v516_v1  ;;  %500 = vmatprep.subr.bf16.mxu1 %v516_v1  ;;  %v47_v8 = vadd.bf16 %v31_v6, %v15_v4  ;;  %v23_v9 = vld [vmem:[%s688_s0 + $0x20] sm:$0xf]  ;;  %v24_v10 = vld [vmem:[%s688_s0 + $0x24] sm:$0xf]  ;;  %v48_v11 = vadd.bf16 %v32_v7, %v16_v5  ;;  %v521_v20 = vld [vmem:[%s687_s2 + $0x30] sm:$0xff]  }
   0x5   :  { %v39_v12 = vld [vmem:[%s689_s1 + $0x20] sm:$0xf]  ;;  %v40_v13 = vld [vmem:[%s689_s1 + $0x24] sm:$0xf]  ;;  %v17_v21 = vld [vmem:[%s688_s0 + $0x8] sm:$0xf] }
   0x6   :  { %v55_v14 = vadd.bf16 %v39_v12, %v23_v9  ;;  %v56_v15 = vadd.bf16 %v40_v13, %v24_v10  ;;  %v519_v16 = vld [vmem:[%s687_s2 + $0x20] sm:$0xff]   ;;  %v356_v17 = vcombine.low %v47_v8, %v48_v11  ;;  %v33_v22 = vld [vmem:[%s689_s1 + $0x8] sm:$0xf]  ;;  %v18_v23 = vld [vmem:[%s688_s0 + $0xc] sm:$0xf] }
   0x7   :  { %470 = vmatpush3.bf16.msra.mxu0 %v516_v1  ;;  %508 = vmatpush3.bf16.msra.mxu1 %v516_v1  ;;  %v34_v24 = vld [vmem:[%s689_s1 + $0xc] sm:$0xf]  ;;  %v25_v25 = vld [vmem:[%s688_s0 + $0x28] sm:$0xf]  ;;  %v522_v28 = vld [vmem:[%s687_s2 + $0x38] sm:$0xff]   ;;  %v49_v38 = vadd.bf16 %v33_v22, %v17_v21 }
   0x8   :  { %471 = vmatprep.subr.bf16.mxu0 %v517_v2  ;;  %501 = vmatprep.subr.bf16.mxu1 %v517_v2  ;;  %v360_v18 = vcombine.low %v55_v14, %v56_v15  ;;  %v26_v26 = vld [vmem:[%s688_s0 + $0x2c] sm:$0xf]  ;;  %v41_v27 = vld [vmem:[%s689_s1 + $0x28] sm:$0xf]  ;;  %v19_v30 = vld [vmem:[%s688_s0 + $0x10] sm:$0xf]  ;;  %v50_v39 = vadd.bf16 %v34_v24, %v18_v23 }
   0x9   :  { %483 = vmatprep.mubr.bf16.mxu0 %v356_v17  ;;  %v42_v29 = vld [vmem:[%s689_s1 + $0x2c] sm:$0xf]  ;;  %v20_v31 = vld [vmem:[%s688_s0 + $0x14] sm:$0xf]  ;;  %v35_v32 = vld [vmem:[%s689_s1 + $0x10] sm:$0xf]  ;;  %v57_v40 = vadd.bf16 %v41_v27, %v25_v25 }
   0xa   :  { %491 = vmatprep.mubr.bf16.mxu1 %v360_v18  ;;  %v36_v33 = vld [vmem:[%s689_s1 + $0x14] sm:$0xf]  ;;  %v27_v34 = vld [vmem:[%s688_s0 + $0x30] sm:$0xf]  ;;  %v58_v41 = vadd.bf16 %v42_v29, %v26_v26  ;;  %v51_v42 = vadd.bf16 %v35_v32, %v19_v30  ;;  %v21_v46 = vld [vmem:[%s688_s0 + $0x18] sm:$0xf]  ;;  %v357_v48 = vcombine.low %v49_v38, %v50_v39 }
   0xb   :  { %472 = vmatpush3.bf16.msra.mxu0 %v517_v2  ;;  %509 = vmatpush3.bf16.msra.mxu1 %v517_v2  ;;  %v28_v35 = vld [vmem:[%s688_s0 + $0x34] sm:$0xf]  ;;  %v43_v36 = vld [vmem:[%s689_s1 + $0x30] sm:$0xf]  ;;  %v52_v43 = vadd.bf16 %v36_v33, %v20_v31  ;;  %v22_v47 = vld [vmem:[%s688_s0 + $0x1c] sm:$0xf] }
   0xc   :  { %473 = vmatprep.subr.bf16.mxu0 %v518_v3  ;;  %502 = vmatprep.subr.bf16.mxu1 %v518_v3  ;;  %v44_v37 = vld [vmem:[%s689_s1 + $0x34] sm:$0xf]  ;;  %v59_v44 = vadd.bf16 %v43_v36, %v27_v34  ;;  %v361_v49 = vcombine.low %v57_v40, %v58_v41  ;;  %v37_v50 = vld [vmem:[%s689_s1 + $0x18] sm:$0xf]  ;;  %v38_v51 = vld [vmem:[%s689_s1 + $0x1c] sm:$0xf] }
   0xd   :  { %v60_v45 = vadd.bf16 %v44_v37, %v28_v35  ;;  %v29_v52 = vld [vmem:[%s688_s0 + $0x38] sm:$0xf]  ;;  %v358_v53 = vcombine.low %v51_v42, %v52_v43  ;;  %v30_v55 = vld [vmem:[%s688_s0 + $0x3c] sm:$0xf]  ;;  %v53_v58 = vadd.bf16 %v37_v50, %v21_v46  ;;  %v54_v59 = vadd.bf16 %v38_v51, %v22_v47 }
   0xe   :  { %v45_v56 = vld [vmem:[%s689_s1 + $0x38] sm:$0xf]  ;;  %v46_v57 = vld [vmem:[%s689_s1 + $0x3c] sm:$0xf] }
   0xf   :  { %474 = vmatpush3.bf16.msra.mxu0 %v518_v3  ;;  %510 = vmatpush3.bf16.msra.mxu1 %v518_v3  ;;  %v362_v54 = vcombine.low %v59_v44, %v60_v45  ;;  %v61_v60 = vadd.bf16 %v45_v56, %v29_v52  ;;  %v62_v61 = vadd.bf16 %v46_v57, %v30_v55 }
  0x10   :  { %475 = vmatprep.subr.bf16.mxu0 %v519_v16  ;;  %503 = vmatprep.subr.bf16.mxu1 %v519_v16  ;;  %v359_v62 = vcombine.low %v53_v58, %v54_v59 }
  0x11   :  { %v363_v63 = vcombine.low %v61_v60, %v62_v61 }
  0x13   :  { %476 = vmatpush3.bf16.msra.mxu0 %v519_v16  ;;  %511 = vmatpush3.bf16.msra.mxu1 %v519_v16 }
  0x14   :  { %477 = vmatprep.subr.bf16.mxu0 %v520_v19  ;;  %504 = vmatprep.subr.bf16.mxu1 %v520_v19 }
  0x17   :  { %478 = vmatpush3.bf16.msra.mxu0 %v520_v19  ;;  %512 = vmatpush3.bf16.msra.mxu1 %v520_v19 }
  0x18   :  { %479 = vmatprep.subr.bf16.mxu0 %v521_v20  ;;  %505 = vmatprep.subr.bf16.mxu1 %v521_v20 }
  0x1b   :  { %480 = vmatpush3.bf16.msra.mxu0 %v521_v20  ;;  %513 = vmatpush3.bf16.msra.mxu1 %v521_v20 }
  0x1c   :  { %481 = vmatprep.subr.bf16.mxu0 %v522_v28  ;;  %506 = vmatprep.subr.bf16.mxu1 %v522_v28 }
  0x1f   :  { %482 = vmatpush3.bf16.msra.mxu0 %v522_v28  ;;  %514 = vmatpush3.bf16.msra.mxu1 %v522_v28 }
  0x22   :  { %484 = vmatmul.mubr.bf16.vlgmr.msra.gmra.mrb[0].mxu0 %v357_v48  ;;  %492 = vmatmul.mubr.bf16.vlgmr.msra.gmra.mrb[0].mxu1 %v361_v49 }
  0x23   :  { %487 = vmatprep.mubr.bf16.mxu0 %v358_v53  ;;  %495 = vmatprep.mubr.bf16.mxu1 %v362_v54 }
  0x2a   :  { %488 = vmatmul.mubr.bf16.gmra.mrb[4].mxu0 %v359_v62  ;;  %496 = vmatmul.mubr.bf16.gmra.mrb[4].mxu1 %v363_v63 }
  0xf5   :  { %v485_v0 = vpop.f32.mrb[0].mxu0  ;;  %v493_v1 = vpop.f32.mrb[0].mxu1 }
  0xf6   :  { %v209_v2 = vpop.f32.mrb[1].mxu0  ;;  %v241_v3 = vpop.f32.mrb[1].mxu1 }
  0xf7   :  { %v486_v4 = vpop.f32.mrb[2].mxu0  ;;  %v494_v5 = vpop.f32.mrb[2].mxu1 }
  0xf8   :  { %v412_v6 = vpack.c.bf16 %v486_v4, %v485_v0  ;;  %v432_v7 = vpack.c.bf16 %v494_v5, %v493_v1  ;;  %v212_v8 = vpop.f32.mrb[3].mxu0  ;;  %v244_v9 = vpop.f32.mrb[3].mxu1 }
  0xf9   :  { %v407_v10 = vpack.c.bf16 %v212_v8, %v209_v2  ;;  %v427_v11 = vpack.c.bf16 %v244_v9, %v241_v3 }
  0xfa   :  { %444 = vst [vmem:[%s690_s3 + $0x8] sm:$0xff] %v412_v6   ;;  %448 = vst [vmem:[%s690_s3 + $0x28] sm:$0xff] %v432_v7  }
  0xfb   :  { %408 = vst [vmem:[%s690_s3] sm:$0xff] %v407_v10   ;;  %447 = vst [vmem:[%s690_s3 + $0x20] sm:$0xff] %v427_v11  }
  0xfd   :  { %v489_v12 = vpop.f32.mrb[4].mxu0  ;;  %v497_v13 = vpop.f32.mrb[4].mxu1 }
  0xfe   :  { %v225_v14 = vpop.f32.mrb[5].mxu0  ;;  %v257_v15 = vpop.f32.mrb[5].mxu1 }
  0xff   :  { %v490_v16 = vpop.f32.mrb[6].mxu0  ;;  %v498_v17 = vpop.f32.mrb[6].mxu1 }
 0x100   :  { %v422_v18 = vpack.c.bf16 %v490_v16, %v489_v12  ;;  %v442_v19 = vpack.c.bf16 %v498_v17, %v497_v13  ;;  %v228_v20 = vpop.f32.mrb[7].mxu0  ;;  %v260_v21 = vpop.f32.mrb[7].mxu1 }
 0x101   :  { %v417_v22 = vpack.c.bf16 %v228_v20, %v225_v14  ;;  %v437_v23 = vpack.c.bf16 %v260_v21, %v257_v15 }
 0x102   :  { %446 = vst [vmem:[%s690_s3 + $0x18] sm:$0xff] %v422_v18   ;;  %450 = vst [vmem:[%s690_s3 + $0x38] sm:$0xff] %v442_v19  }
 0x103   :  { %445 = vst [vmem:[%s690_s3 + $0x10] sm:$0xff] %v417_v22   ;;  %449 = vst [vmem:[%s690_s3 + $0x30] sm:$0xff] %v437_v23  }

// kernel: cross_model_forward.8
= control target key start
LH: loop header
LB: loop body
LE: loop exit
PB: predicated region body
PF: predicated region fallthrough
CT: control target
= control target key end

     0   :  { %s583_s1 = inlined_call_operand.vmem [shape: bf16[128,128], index: 1, kind: input, shape index: {}]   ;;  %s584_s0 = inlined_call_operand.vmem [shape: bf16[128,128], index: 0, kind: input, shape index: {}]   ;;  %s585_s2 = inlined_call_operand.vmem [shape: bf16[128,128], index: 2, kind: output, shape index: {}]  }
   0x1   :  { %v480_v0 = vld [vmem:[%s583_s1] sm:$0xff]   ;;  %v481_v1 = vld [vmem:[%s583_s1 + $0x8] sm:$0xff]   ;;  %v482_v2 = vld [vmem:[%s583_s1 + $0x10] sm:$0xff]  }
   0x2   :  { %432 = vmatprep.subr.bf16.mxu0 %v480_v0  ;;  %464 = vmatprep.subr.bf16.mxu1 %v480_v0  ;;  %v483_v3 = vld [vmem:[%s583_s1 + $0x18] sm:$0xff]   ;;  %v488_v4 = vld [vmem:[%s584_s0] sm:$0xff]   ;;  %v485_v7 = vld [vmem:[%s583_s1 + $0x28] sm:$0xff]  }
   0x3   :  { %433 = vmatpush3.bf16.msra.mxu0 %v480_v0  ;;  %472 = vmatpush3.bf16.msra.mxu1 %v480_v0  ;;  %v489_v5 = vld [vmem:[%s584_s0 + $0x20] sm:$0xff]   ;;  %v486_v8 = vld [vmem:[%s583_s1 + $0x30] sm:$0xff]   ;;  %v487_v9 = vld [vmem:[%s583_s1 + $0x38] sm:$0xff]  }
   0x4   :  { %434 = vmatprep.subr.bf16.mxu0 %v481_v1  ;;  %465 = vmatprep.subr.bf16.mxu1 %v481_v1  ;;  %v484_v6 = vld [vmem:[%s583_s1 + $0x20] sm:$0xff]   ;;  %v490_v10 = vld [vmem:[%s584_s0 + $0x8] sm:$0xff]   ;;  %v492_v12 = vld [vmem:[%s584_s0 + $0x10] sm:$0xff]  }
   0x5   :  { %448 = vmatprep.mubr.bf16.mxu0 %v488_v4  ;;  %456 = vmatprep.mubr.bf16.mxu1 %v489_v5  ;;  %v491_v11 = vld [vmem:[%s584_s0 + $0x28] sm:$0xff]   ;;  %v493_v13 = vld [vmem:[%s584_s0 + $0x30] sm:$0xff]   ;;  %v494_v14 = vld [vmem:[%s584_s0 + $0x18] sm:$0xff]  }
   0x6   :  { %v495_v15 = vld [vmem:[%s584_s0 + $0x38] sm:$0xff]  }
   0x7   :  { %435 = vmatpush3.bf16.msra.mxu0 %v481_v1  ;;  %473 = vmatpush3.bf16.msra.mxu1 %v481_v1 }
   0x8   :  { %436 = vmatprep.subr.bf16.mxu0 %v482_v2  ;;  %466 = vmatprep.subr.bf16.mxu1 %v482_v2 }
   0xb   :  { %437 = vmatpush3.bf16.msra.mxu0 %v482_v2  ;;  %474 = vmatpush3.bf16.msra.mxu1 %v482_v2 }
   0xc   :  { %438 = vmatprep.subr.bf16.mxu0 %v483_v3  ;;  %467 = vmatprep.subr.bf16.mxu1 %v483_v3 }
   0xf   :  { %439 = vmatpush3.bf16.msra.mxu0 %v483_v3  ;;  %475 = vmatpush3.bf16.msra.mxu1 %v483_v3 }
  0x10   :  { %440 = vmatprep.subr.bf16.mxu0 %v484_v6  ;;  %468 = vmatprep.subr.bf16.mxu1 %v484_v6 }
  0x13   :  { %441 = vmatpush3.bf16.msra.mxu0 %v484_v6  ;;  %476 = vmatpush3.bf16.msra.mxu1 %v484_v6 }
  0x14   :  { %442 = vmatprep.subr.bf16.mxu0 %v485_v7  ;;  %469 = vmatprep.subr.bf16.mxu1 %v485_v7 }
  0x17   :  { %443 = vmatpush3.bf16.msra.mxu0 %v485_v7  ;;  %477 = vmatpush3.bf16.msra.mxu1 %v485_v7 }
  0x18   :  { %444 = vmatprep.subr.bf16.mxu0 %v486_v8  ;;  %470 = vmatprep.subr.bf16.mxu1 %v486_v8 }
  0x1b   :  { %445 = vmatpush3.bf16.msra.mxu0 %v486_v8  ;;  %478 = vmatpush3.bf16.msra.mxu1 %v486_v8 }
  0x1c   :  { %446 = vmatprep.subr.bf16.mxu0 %v487_v9  ;;  %471 = vmatprep.subr.bf16.mxu1 %v487_v9 }
  0x1f   :  { %447 = vmatpush3.bf16.msra.mxu0 %v487_v9  ;;  %479 = vmatpush3.bf16.msra.mxu1 %v487_v9 }
  0x22   :  { %449 = vmatmul.mubr.bf16.vlgmr.msra.gmra.mrb[0].mxu0 %v490_v10  ;;  %457 = vmatmul.mubr.bf16.vlgmr.msra.gmra.mrb[0].mxu1 %v491_v11 }
  0x23   :  { %452 = vmatprep.mubr.bf16.mxu0 %v492_v12  ;;  %460 = vmatprep.mubr.bf16.mxu1 %v493_v13 }
  0x2a   :  { %453 = vmatmul.mubr.bf16.gmra.mrb[4].mxu0 %v494_v14  ;;  %461 = vmatmul.mubr.bf16.gmra.mrb[4].mxu1 %v495_v15 }
  0xf5   :  { %v450_v16 = vpop.f32.mrb[0].mxu0  ;;  %v458_v17 = vpop.f32.mrb[0].mxu1 }
  0xf6   :  { %v174_v18 = vpop.f32.mrb[1].mxu0  ;;  %v206_v19 = vpop.f32.mrb[1].mxu1 }
  0xf7   :  { %v451_v20 = vpop.f32.mrb[2].mxu0  ;;  %v459_v21 = vpop.f32.mrb[2].mxu1 }
  0xf8   :  { %v377_v22 = vpack.c.bf16 %v451_v20, %v450_v16  ;;  %v397_v23 = vpack.c.bf16 %v459_v21, %v458_v17  ;;  %v177_v24 = vpop.f32.mrb[3].mxu0  ;;  %v209_v25 = vpop.f32.mrb[3].mxu1 }
  0xf9   :  { %v372_v26 = vpack.c.bf16 %v177_v24, %v174_v18  ;;  %v392_v27 = vpack.c.bf16 %v209_v25, %v206_v19 }
  0xfa   :  { %409 = vst [vmem:[%s585_s2 + $0x8] sm:$0xff] %v377_v22   ;;  %413 = vst [vmem:[%s585_s2 + $0x28] sm:$0xff] %v397_v23  }
  0xfb   :  { %373 = vst [vmem:[%s585_s2] sm:$0xff] %v372_v26   ;;  %412 = vst [vmem:[%s585_s2 + $0x20] sm:$0xff] %v392_v27  }
  0xfd   :  { %v454_v28 = vpop.f32.mrb[4].mxu0  ;;  %v462_v29 = vpop.f32.mrb[4].mxu1 }
  0xfe   :  { %v190_v30 = vpop.f32.mrb[5].mxu0  ;;  %v222_v31 = vpop.f32.mrb[5].mxu1 }
  0xff   :  { %v455_v32 = vpop.f32.mrb[6].mxu0  ;;  %v463_v33 = vpop.f32.mrb[6].mxu1 }
 0x100   :  { %v387_v34 = vpack.c.bf16 %v455_v32, %v454_v28  ;;  %v407_v35 = vpack.c.bf16 %v463_v33, %v462_v29  ;;  %v193_v36 = vpop.f32.mrb[7].mxu0  ;;  %v225_v37 = vpop.f32.mrb[7].mxu1 }
 0x101   :  { %v382_v38 = vpack.c.bf16 %v193_v36, %v190_v30  ;;  %v402_v39 = vpack.c.bf16 %v225_v37, %v222_v31 }
 0x102   :  { %411 = vst [vmem:[%s585_s2 + $0x18] sm:$0xff] %v387_v34   ;;  %415 = vst [vmem:[%s585_s2 + $0x38] sm:$0xff] %v407_v35  }
 0x103   :  { %410 = vst [vmem:[%s585_s2 + $0x10] sm:$0xff] %v382_v38   ;;  %414 = vst [vmem:[%s585_s2 + $0x30] sm:$0xff] %v402_v39  }

// kernel: cross_model_forward.9
= control target key start
LH: loop header
LB: loop body
LE: loop exit
PB: predicated region body
PF: predicated region fallthrough
CT: control target
= control target key end

     0   :  { %s721_s1 = inlined_call_operand.vmem [shape: bf16[128,128], index: 1, kind: input, shape index: {}]   ;;  %s722_s0 = inlined_call_operand.vmem [shape: bf16[128,128], index: 0, kind: input, shape index: {}]   ;;  %s723_s2 = inlined_call_operand.vmem [shape: f32[1,128], index: 2, kind: input, shape index: {}]   ;;  %s724_s3 = inlined_call_operand.vmem [shape: bf16[128,128], index: 3, kind: output, shape index: {}]  }
   0x1   :  { %v610_v0 = vld [vmem:[%s721_s1] sm:$0xff]   ;;  %v611_v1 = vld [vmem:[%s721_s1 + $0x8] sm:$0xff]   ;;  %v612_v2 = vld [vmem:[%s721_s1 + $0x10] sm:$0xff]  }
   0x2   :  { %562 = vmatprep.subr.bf16.mxu0 %v610_v0  ;;  %594 = vmatprep.subr.bf16.mxu1 %v610_v0  ;;  %v613_v3 = vld [vmem:[%s721_s1 + $0x18] sm:$0xff]   ;;  %v618_v4 = vld [vmem:[%s722_s0] sm:$0xff]   ;;  %v615_v7 = vld [vmem:[%s721_s1 + $0x28] sm:$0xff]  }
   0x3   :  { %563 = vmatpush3.bf16.msra.mxu0 %v610_v0  ;;  %602 = vmatpush3.bf16.msra.mxu1 %v610_v0  ;;  %v619_v5 = vld [vmem:[%s722_s0 + $0x20] sm:$0xff]   ;;  %v616_v8 = vld [vmem:[%s721_s1 + $0x30] sm:$0xff]   ;;  %v617_v9 = vld [vmem:[%s721_s1 + $0x38] sm:$0xff]  }
   0x4   :  { %564 = vmatprep.subr.bf16.mxu0 %v611_v1  ;;  %595 = vmatprep.subr.bf16.mxu1 %v611_v1  ;;  %v614_v6 = vld [vmem:[%s721_s1 + $0x20] sm:$0xff]   ;;  %v620_v10 = vld [vmem:[%s722_s0 + $0x8] sm:$0xff]   ;;  %v622_v12 = vld [vmem:[%s722_s0 + $0x10] sm:$0xff]  }
   0x5   :  { %578 = vmatprep.mubr.bf16.mxu0 %v618_v4  ;;  %586 = vmatprep.mubr.bf16.mxu1 %v619_v5  ;;  %v621_v11 = vld [vmem:[%s722_s0 + $0x28] sm:$0xff]   ;;  %v623_v13 = vld [vmem:[%s722_s0 + $0x30] sm:$0xff]   ;;  %v624_v14 = vld [vmem:[%s722_s0 + $0x18] sm:$0xff]  }
   0x6   :  { %v625_v15 = vld [vmem:[%s722_s0 + $0x38] sm:$0xff]   ;;  %v466_v16 = vld [vmem:[%s723_s2] ss:$0 sm:$0xff] }
   0x7   :  { %565 = vmatpush3.bf16.msra.mxu0 %v611_v1  ;;  %603 = vmatpush3.bf16.msra.mxu1 %v611_v1 }
   0x8   :  { %566 = vmatprep.subr.bf16.mxu0 %v612_v2  ;;  %596 = vmatprep.subr.bf16.mxu1 %v612_v2 }
   0xb   :  { %567 = vmatpush3.bf16.msra.mxu0 %v612_v2  ;;  %604 = vmatpush3.bf16.msra.mxu1 %v612_v2 }
   0xc   :  { %568 = vmatprep.subr.bf16.mxu0 %v613_v3  ;;  %597 = vmatprep.subr.bf16.mxu1 %v613_v3 }
   0xf   :  { %569 = vmatpush3.bf16.msra.mxu0 %v613_v3  ;;  %605 = vmatpush3.bf16.msra.mxu1 %v613_v3 }
  0x10   :  { %570 = vmatprep.subr.bf16.mxu0 %v614_v6  ;;  %598 = vmatprep.subr.bf16.mxu1 %v614_v6 }
  0x13   :  { %571 = vmatpush3.bf16.msra.mxu0 %v614_v6  ;;  %606 = vmatpush3.bf16.msra.mxu1 %v614_v6 }
  0x14   :  { %572 = vmatprep.subr.bf16.mxu0 %v615_v7  ;;  %599 = vmatprep.subr.bf16.mxu1 %v615_v7 }
  0x17   :  { %573 = vmatpush3.bf16.msra.mxu0 %v615_v7  ;;  %607 = vmatpush3.bf16.msra.mxu1 %v615_v7 }
  0x18   :  { %574 = vmatprep.subr.bf16.mxu0 %v616_v8  ;;  %600 = vmatprep.subr.bf16.mxu1 %v616_v8 }
  0x1b   :  { %575 = vmatpush3.bf16.msra.mxu0 %v616_v8  ;;  %608 = vmatpush3.bf16.msra.mxu1 %v616_v8 }
  0x1c   :  { %576 = vmatprep.subr.bf16.mxu0 %v617_v9  ;;  %601 = vmatprep.subr.bf16.mxu1 %v617_v9 }
  0x1f   :  { %577 = vmatpush3.bf16.msra.mxu0 %v617_v9  ;;  %609 = vmatpush3.bf16.msra.mxu1 %v617_v9 }
  0x22   :  { %579 = vmatmul.mubr.bf16.vlgmr.msra.gmra.mrb[0].mxu0 %v620_v10  ;;  %587 = vmatmul.mubr.bf16.vlgmr.msra.gmra.mrb[0].mxu1 %v621_v11 }
  0x23   :  { %582 = vmatprep.mubr.bf16.mxu0 %v622_v12  ;;  %590 = vmatprep.mubr.bf16.mxu1 %v623_v13 }
  0x2a   :  { %583 = vmatmul.mubr.bf16.gmra.mrb[4].mxu0 %v624_v14  ;;  %591 = vmatmul.mubr.bf16.gmra.mrb[4].mxu1 %v625_v15 }
  0xf5   :  { %v580_v17 = vpop.f32.mrb[0].mxu0  ;;  %v588_v18 = vpop.f32.mrb[0].mxu1 }
  0xf6   :  { %v336_v19 = vadd.f32 %v580_v17, %v466_v16  ;;  %v344_v20 = vadd.f32 %v588_v18, %v466_v16  ;;  %v213_v21 = vpop.f32.mrb[1].mxu0  ;;  %v245_v22 = vpop.f32.mrb[1].mxu1 }
  0xf7   :  { %v334_v23 = vadd.f32 %v466_v16, %v213_v21  ;;  %v342_v24 = vadd.f32 %v466_v16, %v245_v22  ;;  %v581_v25 = vpop.f32.mrb[2].mxu0  ;;  %v589_v26 = vpop.f32.mrb[2].mxu1 }
  0xf8   :  { %v337_v27 = vadd.f32 %v581_v25, %v466_v16  ;;  %v345_v28 = vadd.f32 %v589_v26, %v466_v16  ;;  %v216_v29 = vpop.f32.mrb[3].mxu0  ;;  %v248_v30 = vpop.f32.mrb[3].mxu1  ;;  %v352_v33 = vmax.f32 %v336_v19, 0.0  ;;  %v360_v34 = vmax.f32 %v344_v20, 0.0 }
  0xf9   :  { %v335_v31 = vadd.f32 %v466_v16, %v216_v29  ;;  %v343_v32 = vadd.f32 %v466_v16, %v248_v30  ;;  %v350_v37 = vmax.f32 %v334_v23, 0.0  ;;  %v358_v38 = vmax.f32 %v342_v24, 0.0 }
  0xfa   :  { %v353_v35 = vmax.f32 %v337_v27, 0.0  ;;  %v361_v36 = vmax.f32 %v345_v28, 0.0 }
  0xfb   :  { %v351_v39 = vmax.f32 %v335_v31, 0.0  ;;  %v359_v40 = vmax.f32 %v343_v32, 0.0 }
  0xfc   :  { %v507_v41 = vpack.c.bf16 %v353_v35, %v352_v33  ;;  %v527_v42 = vpack.c.bf16 %v361_v36, %v360_v34 }
  0xfd   :  { %v502_v43 = vpack.c.bf16 %v351_v39, %v350_v37  ;;  %v522_v44 = vpack.c.bf16 %v359_v40, %v358_v38  ;;  %v584_v45 = vpop.f32.mrb[4].mxu0  ;;  %v592_v46 = vpop.f32.mrb[4].mxu1 }
  0xfe   :  { %539 = vst [vmem:[%s724_s3 + $0x8] sm:$0xff] %v507_v41   ;;  %543 = vst [vmem:[%s724_s3 + $0x28] sm:$0xff] %v527_v42   ;;  %v340_v47 = vadd.f32 %v584_v45, %v466_v16  ;;  %v348_v48 = vadd.f32 %v592_v46, %v466_v16  ;;  %v229_v49 = vpop.f32.mrb[5].mxu0  ;;  %v261_v50 = vpop.f32.mrb[5].mxu1 }
  0xff   :  { %503 = vst [vmem:[%s724_s3] sm:$0xff] %v502_v43   ;;  %542 = vst [vmem:[%s724_s3 + $0x20] sm:$0xff] %v522_v44   ;;  %v338_v51 = vadd.f32 %v466_v16, %v229_v49  ;;  %v346_v52 = vadd.f32 %v466_v16, %v261_v50  ;;  %v585_v53 = vpop.f32.mrb[6].mxu0  ;;  %v593_v54 = vpop.f32.mrb[6].mxu1 }
 0x100   :  { %v341_v55 = vadd.f32 %v585_v53, %v466_v16  ;;  %v349_v56 = vadd.f32 %v593_v54, %v466_v16  ;;  %v232_v57 = vpop.f32.mrb[7].mxu0  ;;  %v264_v58 = vpop.f32.mrb[7].mxu1  ;;  %v356_v61 = vmax.f32 %v340_v47, 0.0  ;;  %v364_v62 = vmax.f32 %v348_v48, 0.0 }
 0x101   :  { %v339_v59 = vadd.f32 %v466_v16, %v232_v57  ;;  %v347_v60 = vadd.f32 %v466_v16, %v264_v58  ;;  %v354_v1 = vmax.f32 %v338_v51, 0.0  ;;  %v362_v2 = vmax.f32 %v346_v52, 0.0 }
 0x102   :  { %v357_v63 = vmax.f32 %v341_v55, 0.0  ;;  %v365_v0 = vmax.f32 %v349_v56, 0.0 }
 0x103   :  { %v355_v3 = vmax.f32 %v339_v59, 0.0  ;;  %v363_v4 = vmax.f32 %v347_v60, 0.0 }
 0x104   :  { %v517_v5 = vpack.c.bf16 %v357_v63, %v356_v61  ;;  %v537_v6 = vpack.c.bf16 %v365_v0, %v364_v62 }
 0x105   :  { %v512_v7 = vpack.c.bf16 %v355_v3, %v354_v1  ;;  %v532_v8 = vpack.c.bf16 %v363_v4, %v362_v2 }
 0x106   :  { %541 = vst [vmem:[%s724_s3 + $0x18] sm:$0xff] %v517_v5   ;;  %545 = vst [vmem:[%s724_s3 + $0x38] sm:$0xff] %v537_v6  }
 0x107   :  { %540 = vst [vmem:[%s724_s3 + $0x10] sm:$0xff] %v512_v7   ;;  %544 = vst [vmem:[%s724_s3 + $0x30] sm:$0xff] %v532_v8  }

// kernel: cross_model_forward.15
= control target key start
LH: loop header
LB: loop body
LE: loop exit
PB: predicated region body
PF: predicated region fallthrough
CT: control target
= control target key end

     0   :  { %s586_s1 = inlined_call_operand.vmem [shape: bf16[128,128], index: 1, kind: input, shape index: {}]   ;;  %s587_s0 = inlined_call_operand.vmem [shape: bf16[128,128], index: 0, kind: input, shape index: {}]   ;;  %s588_s2 = inlined_call_operand.vmem [shape: f32[1,128], index: 2, kind: input, shape index: {}]   ;;  %s589_s3 = inlined_call_operand.vmem [shape: f32[128,128], index: 3, kind: output, shape index: {}]  }
   0x1   :  { %v451_v0 = vld [vmem:[%s586_s1] sm:$0xff]   ;;  %v452_v1 = vld [vmem:[%s586_s1 + $0x8] sm:$0xff]   ;;  %v453_v2 = vld [vmem:[%s586_s1 + $0x10] sm:$0xff]  }
   0x2   :  { %403 = vmatprep.subr.bf16.mxu0 %v451_v0  ;;  %435 = vmatprep.subr.bf16.mxu1 %v451_v0  ;;  %v454_v3 = vld [vmem:[%s586_s1 + $0x18] sm:$0xff]   ;;  %v459_v4 = vld [vmem:[%s587_s0] sm:$0xff]   ;;  %v456_v7 = vld [vmem:[%s586_s1 + $0x28] sm:$0xff]  }
   0x3   :  { %404 = vmatpush3.bf16.msra.mxu0 %v451_v0  ;;  %443 = vmatpush3.bf16.msra.mxu1 %v451_v0  ;;  %v460_v5 = vld [vmem:[%s587_s0 + $0x20] sm:$0xff]   ;;  %v457_v8 = vld [vmem:[%s586_s1 + $0x30] sm:$0xff]   ;;  %v458_v9 = vld [vmem:[%s586_s1 + $0x38] sm:$0xff]  }
   0x4   :  { %405 = vmatprep.subr.bf16.mxu0 %v452_v1  ;;  %436 = vmatprep.subr.bf16.mxu1 %v452_v1  ;;  %v455_v6 = vld [vmem:[%s586_s1 + $0x20] sm:$0xff]   ;;  %v461_v10 = vld [vmem:[%s587_s0 + $0x8] sm:$0xff]   ;;  %v463_v12 = vld [vmem:[%s587_s0 + $0x10] sm:$0xff]  }
   0x5   :  { %419 = vmatprep.mubr.bf16.mxu0 %v459_v4  ;;  %427 = vmatprep.mubr.bf16.mxu1 %v460_v5  ;;  %v462_v11 = vld [vmem:[%s587_s0 + $0x28] sm:$0xff]   ;;  %v464_v13 = vld [vmem:[%s587_s0 + $0x30] sm:$0xff]   ;;  %v465_v14 = vld [vmem:[%s587_s0 + $0x18] sm:$0xff]  }
   0x6   :  { %v466_v15 = vld [vmem:[%s587_s0 + $0x38] sm:$0xff]   ;;  %v386_v16 = vld [vmem:[%s588_s2] ss:$0 sm:$0xff] }
   0x7   :  { %406 = vmatpush3.bf16.msra.mxu0 %v452_v1  ;;  %444 = vmatpush3.bf16.msra.mxu1 %v452_v1 }
   0x8   :  { %407 = vmatprep.subr.bf16.mxu0 %v453_v2  ;;  %437 = vmatprep.subr.bf16.mxu1 %v453_v2 }
   0xb   :  { %408 = vmatpush3.bf16.msra.mxu0 %v453_v2  ;;  %445 = vmatpush3.bf16.msra.mxu1 %v453_v2 }
   0xc   :  { %409 = vmatprep.subr.bf16.mxu0 %v454_v3  ;;  %438 = vmatprep.subr.bf16.mxu1 %v454_v3 }
   0xf   :  { %410 = vmatpush3.bf16.msra.mxu0 %v454_v3  ;;  %446 = vmatpush3.bf16.msra.mxu1 %v454_v3 }
  0x10   :  { %411 = vmatprep.subr.bf16.mxu0 %v455_v6  ;;  %439 = vmatprep.subr.bf16.mxu1 %v455_v6 }
  0x13   :  { %412 = vmatpush3.bf16.msra.mxu0 %v455_v6  ;;  %447 = vmatpush3.bf16.msra.mxu1 %v455_v6 }
  0x14   :  { %413 = vmatprep.subr.bf16.mxu0 %v456_v7  ;;  %440 = vmatprep.subr.bf16.mxu1 %v456_v7 }
  0x17   :  { %414 = vmatpush3.bf16.msra.mxu0 %v456_v7  ;;  %448 = vmatpush3.bf16.msra.mxu1 %v456_v7 }
  0x18   :  { %415 = vmatprep.subr.bf16.mxu0 %v457_v8  ;;  %441 = vmatprep.subr.bf16.mxu1 %v457_v8 }
  0x1b   :  { %416 = vmatpush3.bf16.msra.mxu0 %v457_v8  ;;  %449 = vmatpush3.bf16.msra.mxu1 %v457_v8 }
  0x1c   :  { %417 = vmatprep.subr.bf16.mxu0 %v458_v9  ;;  %442 = vmatprep.subr.bf16.mxu1 %v458_v9 }
  0x1f   :  { %418 = vmatpush3.bf16.msra.mxu0 %v458_v9  ;;  %450 = vmatpush3.bf16.msra.mxu1 %v458_v9 }
  0x22   :  { %420 = vmatmul.mubr.bf16.vlgmr.msra.gmra.mrb[0].mxu0 %v461_v10  ;;  %428 = vmatmul.mubr.bf16.vlgmr.msra.gmra.mrb[0].mxu1 %v462_v11 }
  0x23   :  { %423 = vmatprep.mubr.bf16.mxu0 %v463_v12  ;;  %431 = vmatprep.mubr.bf16.mxu1 %v464_v13 }
  0x2a   :  { %424 = vmatmul.mubr.bf16.gmra.mrb[4].mxu0 %v465_v14  ;;  %432 = vmatmul.mubr.bf16.gmra.mrb[4].mxu1 %v466_v15 }
  0xf5   :  { %v421_v17 = vpop.f32.mrb[0].mxu0  ;;  %v429_v18 = vpop.f32.mrb[0].mxu1 }
  0xf6   :  { %v336_v19 = vadd.f32 %v421_v17, %v386_v16  ;;  %v344_v20 = vadd.f32 %v429_v18, %v386_v16  ;;  %v213_v21 = vpop.f32.mrb[1].mxu0  ;;  %v245_v22 = vpop.f32.mrb[1].mxu1 }
  0xf7   :  { %v334_v23 = vadd.f32 %v386_v16, %v213_v21  ;;  %v342_v24 = vadd.f32 %v386_v16, %v245_v22  ;;  %v422_v25 = vpop.f32.mrb[2].mxu0  ;;  %v430_v26 = vpop.f32.mrb[2].mxu1 }
  0xf8   :  { %352 = vst [vmem:[%s589_s3 + $0x10] sm:$0xff] %v336_v19  ;;  %360 = vst [vmem:[%s589_s3 + $0x50] sm:$0xff] %v344_v20  ;;  %v337_v27 = vadd.f32 %v422_v25, %v386_v16  ;;  %v345_v28 = vadd.f32 %v430_v26, %v386_v16  ;;  %v216_v29 = vpop.f32.mrb[3].mxu0  ;;  %v248_v30 = vpop.f32.mrb[3].mxu1 }
  0xf9   :  { %350 = vst [vmem:[%s589_s3] sm:$0xff] %v334_v23  ;;  %358 = vst [vmem:[%s589_s3 + $0x40] sm:$0xff] %v342_v24  ;;  %v335_v31 = vadd.f32 %v386_v16, %v216_v29  ;;  %v343_v32 = vadd.f32 %v386_v16, %v248_v30 }
  0xfa   :  { %353 = vst [vmem:[%s589_s3 + $0x18] sm:$0xff] %v337_v27  ;;  %361 = vst [vmem:[%s589_s3 + $0x58] sm:$0xff] %v345_v28 }
  0xfb   :  { %351 = vst [vmem:[%s589_s3 + $0x8] sm:$0xff] %v335_v31  ;;  %359 = vst [vmem:[%s589_s3 + $0x48] sm:$0xff] %v343_v32 }
  0xfd   :  { %v425_v33 = vpop.f32.mrb[4].mxu0  ;;  %v433_v34 = vpop.f32.mrb[4].mxu1 }
  0xfe   :  { %v340_v35 = vadd.f32 %v425_v33, %v386_v16  ;;  %v348_v36 = vadd.f32 %v433_v34, %v386_v16  ;;  %v229_v37 = vpop.f32.mrb[5].mxu0  ;;  %v261_v38 = vpop.f32.mrb[5].mxu1 }
  0xff   :  { %v338_v39 = vadd.f32 %v386_v16, %v229_v37  ;;  %v346_v40 = vadd.f32 %v386_v16, %v261_v38  ;;  %v426_v41 = vpop.f32.mrb[6].mxu0  ;;  %v434_v42 = vpop.f32.mrb[6].mxu1 }
 0x100   :  { %356 = vst [vmem:[%s589_s3 + $0x30] sm:$0xff] %v340_v35  ;;  %364 = vst [vmem:[%s589_s3 + $0x70] sm:$0xff] %v348_v36  ;;  %v341_v43 = vadd.f32 %v426_v41, %v386_v16  ;;  %v349_v44 = vadd.f32 %v434_v42, %v386_v16  ;;  %v232_v45 = vpop.f32.mrb[7].mxu0  ;;  %v264_v46 = vpop.f32.mrb[7].mxu1 }
 0x101   :  { %354 = vst [vmem:[%s589_s3 + $0x20] sm:$0xff] %v338_v39  ;;  %362 = vst [vmem:[%s589_s3 + $0x60] sm:$0xff] %v346_v40  ;;  %v339_v47 = vadd.f32 %v386_v16, %v232_v45  ;;  %v347_v48 = vadd.f32 %v386_v16, %v264_v46 }
 0x102   :  { %357 = vst [vmem:[%s589_s3 + $0x38] sm:$0xff] %v341_v43  ;;  %365 = vst [vmem:[%s589_s3 + $0x78] sm:$0xff] %v349_v44 }
 0x103   :  { %355 = vst [vmem:[%s589_s3 + $0x28] sm:$0xff] %v339_v47  ;;  %363 = vst [vmem:[%s589_s3 + $0x68] sm:$0xff] %v347_v48 }

</bundles_post_ra>
